<compile_context>
chip_gen: v7x
topology: tpu7x:2x2x1
jax: 0.10.0
libtpu: 0.0.40
codegen_flags: <defaults>
</compile_context>

<pallas_src>
import math

import jax
import jax.numpy as jnp
import numpy as np
from jax import lax
from jax.experimental import pallas as pl
from jax.experimental.pallas import tpu as pltpu


def _pool_sum_matrix_and_scale(h, w, ho, wo):
    """0/1 'sum' matrix (ho*wo, h*w) plus per-output-row 1/window_size scale,
    matching nn.AdaptiveAvgPool2d window arithmetic exactly."""
    P = np.zeros((ho * wo, h * w), dtype=np.float32)
    scale = np.zeros((ho * wo, 1), dtype=np.float32)
    for oi in range(ho):
        i0 = (oi * h) // ho
        i1 = -((-(oi + 1) * h) // ho)          # ceil((oi+1)*h/ho)
        for oj in range(wo):
            j0 = (oj * w) // wo
            j1 = -((-(oj + 1) * w) // wo)      # ceil((oj+1)*w/wo)
            row = oi * wo + oj
            scale[row, 0] = 1.0 / float((i1 - i0) * (j1 - j0))
            for i in range(i0, i1):
                for j in range(j0, j1):
                    P[row, i * w + j] = 1.0
    return P, scale


def _token_down_kernel(p_ref, s_ref, x_ref, o_ref):
    # p_ref : (M, N)  0/1 sum matrix in x.dtype (VMEM-resident across the grid)
    # s_ref : (M, 1)  f32 per-row 1/window_size
    # x_ref : (Bt, N, Tc) token block, o_ref: (Bt, M, Tc) pooled tokens.
    bt, m, tc = o_ref.shape
    p = p_ref[...]
    # Hoist the broadcast out of the batch loop (JAX does not CSE it).
    scale = jnp.broadcast_to(s_ref[...], (m, tc))

    def body(i, carry):
        acc = jnp.dot(p, x_ref[i], preferred_element_type=jnp.float32)
        o_ref[i] = (acc * scale).astype(o_ref.dtype)
        return carry

    # fori_loop (not a static Python for) bounds live ranges; unroll for LLO
    # scheduler visibility.  bt is capped at 8 by _choose_tiles.
    lax.fori_loop(0, bt, body, None, unroll=True)


def _cdiv(a, b):
    return -(-a // b)


def _vmem_limit_bytes():
    # v5e/v6e: 128 MiB physical -> cap at 64 MiB scoped; v7x: 64 MiB -> 48 MiB.
    try:
        vcap = int(pltpu.get_tpu_info().vmem_capacity_bytes)
    except Exception:
        vcap = 64 << 20                      # assume the smallest (v7x) if unknown
    return min(64 << 20, (vcap * 3) // 4)


def _choose_tiles(b, n, m, c, itemsize, avail_bytes, max_bt=8, min_grid_steps=4):
    """Pick (Bt, Tc).  c must already be a multiple of 128."""
    tcs = [d for d in range(128, c + 1, 128) if c % d == 0]   # ascending divisors

    def block_bytes(bt_, tc_):
        # double-buffered input block + double-buffered output block
        return 2 * bt_ * (n + m) * tc_ * itemsize

    # Largest lane-dense channel tile that fits the budget for one batch.
    tc = next((d for d in reversed(tcs) if block_bytes(1, d) <= avail_bytes), tcs[0])
    if block_bytes(1, tc) > avail_bytes:
        raise ValueError(
            f"TokenDownLayer tile does not fit in VMEM (n={n}, m={m}, tc={tc}, "
            f"itemsize={itemsize}, avail={avail_bytes})")
    bt = int(max(1, min(b, max_bt, avail_bytes // block_bytes(1, tc))))

    def steps(bt_, tc_):
        return _cdiv(b, bt_) * (c // tc_)

    # Keep v7x's two TensorCores fed: prefer >= min_grid_steps parallel steps.
    while bt > 1 and steps(bt, tc) < min_grid_steps:
        bt = max(1, bt // 2)
    if steps(bt, tc) < min_grid_steps:
        for d in reversed(tcs):              # largest Tc that reaches the target
            if steps(bt, d) >= min_grid_steps:
                tc = d
                break
    return bt, tc


def token_down_layer(x, out_shape):
    """x: (B, N, C) array, N a perfect square. Returns (B, Ho*Wo, C)."""
    b, n, c = x.shape
    h = int(math.isqrt(n))
    assert h * h == n, "num_tokens must be a perfect square"
    ho, wo = out_shape
    m = ho * wo

    p_np, s_np = _pool_sum_matrix_and_scale(h, h, ho, wo)
    # 0/1 entries are exact in any float dtype -> native bf16 MXU path while the
    # averaging itself stays exact via the f32 per-row scale on the accumulator.
    pool_sum = jnp.asarray(p_np).astype(x.dtype)           # (M, N)
    row_scale = jnp.asarray(s_np)                          # (M, 1) float32

    # Lane-dense channel axis: pad C up to a multiple of 128 so every store is
    # a full (unmasked) vst.
    # TODO(synk): pad at the producer to avoid this extra HBM pass when C is
    # not already a multiple of 128 (typical LLaVA C=1024..4096 needs no pad).
    c_pad = _cdiv(c, 128) * 128
    xp = jnp.pad(x, ((0, 0), (0, 0), (0, c_pad - c))) if c_pad != c else x

    itemsize = jnp.dtype(x.dtype).itemsize
    vmem_limit = _vmem_limit_bytes()
    # Resident footprint: P (assume double-buffered by the pipeline) + scale
    # (lane-padded) + a little compiler-scratch headroom.
    resident = 2 * m * n * itemsize + m * 128 * 4
    headroom = 2 << 20
    bt, tc = _choose_tiles(b, n, m, c_pad, itemsize,
                           avail_bytes=vmem_limit - resident - headroom)
    grid = (_cdiv(b, bt), c_pad // tc)

    out = pl.pallas_call(
        _token_down_kernel,
        out_shape=jax.ShapeDtypeStruct((b, m, c_pad), x.dtype),
        grid=grid,
        in_specs=[
            # Pooling matrix / scale: same block every step -> VMEM resident.
            pl.BlockSpec((m, n), lambda i, j: (0, 0)),
            pl.BlockSpec((m, 1), lambda i, j: (0, 0)),
            # Batch tile x channel tile of the tokens.
            # NOTE: if profiling on v7x shows exposed DMA at tiny grids, sweep
            # pipeline_mode=pl.Buffered(3) on this spec.
            pl.BlockSpec((bt, n, tc), lambda i, j: (i, 0, j)),
        ],
        out_specs=pl.BlockSpec((bt, m, tc), lambda i, j: (i, 0, j)),
        compiler_params=pltpu.CompilerParams(
            dimension_semantics=("parallel", "parallel"),
            vmem_limit_bytes=vmem_limit,
        ),
    )(pool_sum, row_scale, xp)

    return out[:, :, :c] if c_pad != c else out


def _reference(x, out_shape):
    """Plain-JAX reference mirroring the PyTorch forward (f32 pooling)."""
    b, n, c = x.shape
    h = int(math.isqrt(n))
    ho, wo = out_shape
    p_np, s_np = _pool_sum_matrix_and_scale(h, h, ho, wo)
    pool = jnp.asarray(p_np * s_np)                        # weighted f32 (M, N)
    return jnp.einsum("mn,bnc->bmc", pool, x.astype(jnp.float32))


if __name__ == "__main__":
    # Small f32 case (C=32, not a multiple of 128 -> padded lane-dense path).
    key = jax.random.PRNGKey(0)
    B, H, C = 2, 16, 32               # num_tokens = 16*16 = 256
    OUT_SHAPE = (8, 8)                # AdaptiveAvgPool2d((8, 8))
    x = jax.random.normal(key, (B, H * H, C), dtype=jnp.float32)

    out = jax.block_until_ready(token_down_layer(x, OUT_SHAPE))
    ref = _reference(x, OUT_SHAPE)
    assert out.shape == (B, OUT_SHAPE[0] * OUT_SHAPE[1], C)
    np.testing.assert_allclose(np.asarray(out), np.asarray(ref),
                               rtol=1e-5, atol=1e-5)

    # bf16 case (C multiple of 128 -> tiled channel axis, bf16 MXU, exact
    # averaging: only the final bf16 output cast limits accuracy).
    x2 = jax.random.normal(jax.random.PRNGKey(1), (3, 16 * 16, 256),
                           dtype=jnp.bfloat16)
    out2 = jax.block_until_ready(token_down_layer(x2, (8, 8)))
    ref2 = _reference(x2, (8, 8))
    np.testing.assert_allclose(np.asarray(out2, dtype=np.float32),
                               np.asarray(ref2), rtol=1e-2, atol=1e-2)

    print("KERNEL_OK")
</pallas_src>

<mosaic_0001>
module attributes {stable_mosaic.version = 11 : i64} {
  func.func @_token_down_kernel(%arg0: i32, %arg1: i32, %arg2: memref<64x256xf32, #tpu.memory_space<vmem>>, %arg3: memref<64x1xf32, #tpu.memory_space<vmem>>, %arg4: memref<1x256x128xf32, #tpu.memory_space<vmem>>, %arg5: memref<1x64x128xf32, #tpu.memory_space<vmem>>) attributes {dimension_semantics = [#tpu.dimension_semantics<parallel>, #tpu.dimension_semantics<parallel>], iteration_bounds = array<i64: 2, 1>, scalar_prefetch = 0 : i64, scratch_operands = 0 : i64, tpu.core_type = #tpu.core_type<tc>, window_params = [{pipeline_mode = #tpu.pipeline_mode<synchronous>, transform_indices = @transform_0, window_bounds = array<i64: 64, 256>}, {pipeline_mode = #tpu.pipeline_mode<synchronous>, transform_indices = @transform_1, window_bounds = array<i64: 64, 1>}, {transform_indices = @transform_2, window_bounds = array<i64: 1, 256, 128>}, {transform_indices = @transform_3, window_bounds = array<i64: 1, 64, 128>}]} {
    %c0 = arith.constant 0 : index
    %c0_0 = arith.constant 0 : index
    %0 = vector.load %arg2[%c0, %c0_0] : memref<64x256xf32, #tpu.memory_space<vmem>>, vector<64x256xf32>
    %c0_1 = arith.constant 0 : index
    %c0_2 = arith.constant 0 : index
    %1 = vector.load %arg3[%c0_1, %c0_2] : memref<64x1xf32, #tpu.memory_space<vmem>>, vector<64x1xf32>
    %2 = vector.shape_cast %1 : vector<64x1xf32> to vector<64x1xf32>
    %3 = vector.broadcast %2 : vector<64x1xf32> to vector<64x128xf32>
    %c0_i32 = arith.constant 0 : i32
    %4 = arith.index_cast %c0_i32 : i32 to index
    %c0_3 = arith.constant 0 : index
    %c0_4 = arith.constant 0 : index
    %5 = vector.load %arg4[%4, %c0_3, %c0_4] : memref<1x256x128xf32, #tpu.memory_space<vmem>>, vector<1x256x128xf32>
    %6 = vector.shape_cast %5 : vector<1x256x128xf32> to vector<256x128xf32>
    %cst = arith.constant dense<0.000000e+00> : vector<64x128xf32>
    %7 = tpu.matmul %0, %6, %cst {dimension_numbers = #tpu.dot_dimension_numbers<[1], [0], [0], [1], [0, 0, 1, 1], [], []>} : vector<64x256xf32>, vector<256x128xf32>, vector<64x128xf32> -> vector<64x128xf32>
    %8 = arith.mulf %7, %3 : vector<64x128xf32>
    %9 = arith.index_cast %c0_i32 : i32 to index
    %c0_5 = arith.constant 0 : index
    %c0_6 = arith.constant 0 : index
    %10 = vector.load %arg5[%9, %c0_5, %c0_6] : memref<1x64x128xf32, #tpu.memory_space<vmem>>, vector<1x64x128xf32>
    %11 = vector.shape_cast %10 : vector<1x64x128xf32> to vector<64x128xf32>
    %12 = vector.shape_cast %8 : vector<64x128xf32> to vector<1x64x128xf32>
    tpu.vector_store %arg5[%9, %c0_5, %c0_6], %12 {strides = array<i32>} : memref<1x64x128xf32, #tpu.memory_space<vmem>>, vector<1x64x128xf32>,
    %c1_i32 = arith.constant 1 : i32
    return
  }
  func.func @transform_0(%arg0: i32, %arg1: i32) -> (i32, i32) {
    %c0_i32 = arith.constant 0 : i32
    %c0_i32_0 = arith.constant 0 : i32
    %c0_i32_1 = arith.constant 0 : i32
    return %c0_i32, %c0_i32_0 : i32, i32
  }
  func.func @transform_1(%arg0: i32, %arg1: i32) -> (i32, i32) {
    %c0_i32 = arith.constant 0 : i32
    %c0_i32_0 = arith.constant 0 : i32
    %c0_i32_1 = arith.constant 0 : i32
    return %c0_i32, %c0_i32_0 : i32, i32
  }
  func.func @transform_2(%arg0: i32, %arg1: i32) -> (i32, i32, i32) {
    %c0_i32 = arith.constant 0 : i32
    %c0_i32_0 = arith.constant 0 : i32
    return %arg0, %c0_i32, %arg1 : i32, i32, i32
  }
  func.func @transform_3(%arg0: i32, %arg1: i32) -> (i32, i32, i32) {
    %c0_i32 = arith.constant 0 : i32
    %c0_i32_0 = arith.constant 0 : i32
    return %arg0, %c0_i32, %arg1 : i32, i32, i32
  }
}

</mosaic_0001>

<bundles_post_ra>
// kernel: tpu_custom_call.1
= control target key start
LH: loop header
LB: loop body
LE: loop exit
PB: predicated region body
PF: predicated region fallthrough
CT: control target
= control target key end

     0   :  { %8 = vsyncpa [#allocation3], 0  ;;  %s1220_s0 = inlined_call_operand.hbm [shape: f32[64,256], index: 0, kind: input, shape index: {}]   ;;  %s1221_s1 = inlined_call_operand.vmem [shape: f32[64,1], index: 1, kind: input, shape index: {}]   ;;  %s1222_s2 = inlined_call_operand.hbm [shape: f32[2,256,128], index: 2, kind: input, shape index: {}]   ;;  %s1223_s3 = inlined_call_operand.hbm [shape: f32[2,64,128], index: 3, kind: output, shape index: {}]  }
   0x1   :  { %9 = vsyncpa [#allocation6], 0 }
   0x2   :  { %11 = vsyncpa [#allocation6 + $0x1], 0 }
   0x3   :  { %12 = vsyncpa [#allocation4], 0 }
   0x4   :  { %14 = vsyncpa [#allocation4 + $0x1], 0  ;;  %s931_s12 = smov 0   ;;  %s933_s13 = smov 0  }
   0x5   :  { %s935_s14 = smov 0   ;;  %s937_s15 = smov 0  }
   0x6   :  { %s939_s16 = smov 0   ;;  %s941_s17 = smov 0  }
   0x7 LB: > { %s550_s18 = sadd.s32 4294967295, %s899_s17   ;;  %s551_s19 = sadd.s32 4294967294, %s899_s17   ;;  %s899_s17 = sphi %s941_s17, %s20_s17   ;;  %s895_s16 = sphi %s939_s16, %s1247_s16   ;;  %s891_s15 = sphi %s937_s15, %s1246_s15   ;;  %s887_s14 = sphi %s935_s14, %s1245_s14   ;;  %s883_s13 = sphi %s933_s13, %s1244_s13   ;;  %s879_s12 = sphi %s931_s12, %s1243_s12  }
   0x8   : > { %p96_p0 = scmp.ne.s32.totalorder %s883_s13, %s879_s12  ;;  %p965_p1 = scmp.eq.s32.totalorder %s550_s18, 0 }
   0x9   : > { %p969_p2 = scmp.eq.s32.totalorder %s550_s18, 1  ;;  %p128_p3 = scmp.eq.s32.totalorder %s551_s19, 1 }
   0xa   : > { %s1228_s20 = scalar_select %p965_p1, 1, 0 }
   0xb   : > { %s1229_s21 = scalar_select %p969_p2, 1, 0 }
   0xc   : > { %p975_p4 = por %p965_p1, %p96_p0  ;;  %p552_p5 = scmp.ge.s32.totalorder %s899_s17, 1 }
   0xd   : > { %p980_p6 = por %p128_p3, %p96_p0  ;;  %p135_p7 = scmp.lt.s32.totalorder %s899_s17, 3 }
   0xe   : > { %s1230_s22 = scalar_select %p975_p4, 1, 0 }
   0xf   : > { %s1231_s23 = scalar_select %p980_p6, 1, 0 }
  0x10   : > { %p985_p8 = pnand %p552_p5, %p135_p7  ;;  %s901_s25 = smov [#allocation2]  }
  0x11   : > { %s147_s26 = sshll.u32 %s901_s25, 4  ;;  %s32_s28 = sadd.s32 1, %s895_s16  ;;  %s148_s26 = int_to_ptr.vmem [resolvable:$true] %s147_s26 }
  0x12   : > { %s1232_s24 = scalar_select %p985_p8, 1, 0 }
  0x13   : > { %p681_p9 = pneg %p985_p8  ;;  %s755_s4 = scalar_lea.hbm %s1220_s0, 2048 }
  0x14   : > { %p756_p12 = scmp.ne.s32.totalorder %s1220_s0, %s755_s4  ;;  %p762_p5 = scmp.lt.u32.totalorder %s755_s4, %s1220_s0 }
  0x15   : > { %p994_p11 = pnand %p681_p9, %p965_p1 }
  0x17   : > { %p757_p13 = pneg %p994_p11 }
  0x19   : > { %p758_p0 = pnand %p757_p13, %p756_p12 }
  0x1b   : > { %p759_p3 = pneg %p758_p0 }
  0x1d   : > { %p764_p7 = pnand %p762_p5, %p759_p3 }
  0x1f   : > { %767 = shalt.err (!%p764_p7)
}
  0x20   : > { %s768_s9 = scalar_lea.vmem %s148_s26, 2048  ;;  %p776_p4 = scmp.lt.s32.totalorder %s148_s26, %s148_s26 }
  0x21   : > { %p769_p9 = scmp.ne.s32.totalorder %s148_s26, %s768_s9  ;;  %p777_p1 = scmp.lt.s32.totalorder %s768_s9, %s768_s9 }
  0x23   : > { %p771_p10 = pnand %p769_p9, %p757_p13  ;;  %p778_p8 = por %p777_p1, %p776_p4 }
  0x25   : > { %p772_p6 = pneg %p771_p10 }
  0x27   : > { %p779_p2 = pnand %p778_p8, %p772_p6 }
  0x29   : > { %782 = shalt.err (!%p779_p2)
}
  0x2a   : > { %s902_s10 = smov 256   ;;  %s903_s11 = smov 16  }
  0x2b   : > { %684 = dma.hbm_to_vmem [thread:$0]  (!%p994_p11), %s1220_s0, 2048, %s148_s26, [#allocation3], %s902_s10, %s902_s10, %s903_s11  }
  0x2c   : > { %p34_p1 = scmp.ge.s32.totalorder %s32_s28, 2  ;;  %s83_s25 = sadd.s32 1, %s887_s14 }
  0x2d   : > { %p90_p2 = scmp.ne.s32.totalorder %s887_s14, %s883_s13  ;;  %p91_p4 = scmp.eq.s32.totalorder %s899_s17, 0 }
  0x2e   : > { %s1249_s28 = smov (%p34_p1, %s32_s28), 0  ;;  %p1235_p8 = scmp.ne.s32.totalorder %s1229_s21, 0 }
  0x2f   : > { %p1021_p6 = por %p91_p4, %p90_p2  ;;  %s78_s27 = ssub.s32 %s895_s16, %s1249_s28 }
  0x30   : > { %p1027_p10 = por %p1235_p8, %p90_p2  ;;  %p694_p12 = scmp.lt.s32.totalorder %s899_s17, 2 }
  0x31   : > { %p81_p11 = scmp.eq.s32.totalorder %s78_s27, 0  ;;  %s164_s26 = sand.u32 1, %s887_s14  }
  0x32   : > { %s555_s4 = sshll.u32 %s164_s26, 8  ;;  %s567_s6 = sshll.u32 %s895_s16, 12 }
  0x33   : > { %s1036_s5 = scalar_select %p81_p11, %s887_s14, %s83_s25  }
  0x34   : > { %s1042_s9 = scalar_lea.hbm %s1222_s2, %s567_s6  ;;  %s168_s21 = scalar_lea.vmem [#allocation5], %s555_s4 }
  0x35   : > { %s176_s10 = sshll.u32 %s168_s21, 4  ;;  %p1048_p13 = pnand %p694_p12, %p1021_p6  ;;  %s1044_s10 = int_to_ptr.vmem [resolvable:$true] %s176_s10 }
  0x36   : > { %s1052_s18 = scalar_lea.sflag [#allocation6], %s164_s26  ;;  %s783_s19 = scalar_lea.hbm %s1042_s9, 4096 }
  0x37   : > { %p784_p0 = scmp.ne.s32.totalorder %s1042_s9, %s783_s19  ;;  %p785_p3 = pneg %p1048_p13 }
  0x38   : > { %s788_s29 = scalar_lea.hbm %s1222_s2, 8192  ;;  %p789_p9 = scmp.lt.u32.totalorder %s1042_s9, %s1222_s2 }
  0x39   : > { %p786_p5 = pnand %p785_p3, %p784_p0  ;;  %p790_p1 = scmp.lt.u32.totalorder %s788_s29, %s783_s19 }
  0x3a   : > { %p792_p4 = scmp.lt.u32.totalorder %s783_s19, %s1042_s9 }
  0x3b   : > { %p787_p7 = pneg %p786_p5  ;;  %p791_p2 = por %p790_p1, %p789_p9 }
  0x3d   : > { %p793_p6 = por %p792_p4, %p791_p2 }
  0x3f   : > { %p794_p8 = pnand %p793_p6, %p787_p7 }
  0x41   : > { %797 = shalt.err (!%p794_p8)
}
  0x42   : > { %s798_s26 = scalar_lea.vmem %s1044_s10, 4096  ;;  %s904_s7 = smov [#allocation5]  }
  0x43   : > { %p799_p12 = scmp.ne.s32.totalorder %s1044_s10, %s798_s26  ;;  %s803_s8 = sshll.u32 %s904_s7, 4  ;;  %s804_s8 = int_to_ptr.vmem [resolvable:$false] %s803_s8 }
  0x44   : > { %s805_s21 = scalar_lea.vmem %s804_s8, 8192  ;;  %p806_p5 = scmp.lt.s32.totalorder %s1044_s10, %s804_s8 }
  0x45   : > { %p801_p11 = pnand %p799_p12, %p785_p3  ;;  %p807_p9 = scmp.lt.s32.totalorder %s805_s21, %s798_s26 }
  0x47   : > { %p802_p0 = pneg %p801_p11  ;;  %p808_p1 = por %p807_p9, %p806_p5 }
  0x49   : > { %p809_p2 = pnand %p808_p1, %p802_p0 }
  0x4b   : > { %812 = shalt.err (!%p809_p2)
}
  0x4c   : > { %s905_s19 = smov 128   ;;  %s906_s25 = smov 8  }
  0x4d   : > { %688 = dma.hbm_to_vmem [thread:$0]  (!%p1048_p13), %s1042_s9, 4096, %s1044_s10, %s1052_s18, %s905_s19, %s905_s19, %s906_s25  }
  0x4e   : > { %p1238_p3 = scmp.ne.s32.totalorder %s1232_s24, 0 }
  0x4f   : > { %p1239_p7 = scmp.ne.s32.totalorder (!%p1238_p3), %s1228_s20, 0 }
  0x50   : > { %188 = sbr.rel (%p1238_p3) target bundleno = 371 (0x173), region = 32 }
  0x57   : > { %866 = dma.done.wait (%p1239_p7), [#allocation3], 2048  }
  0x58   : > { %868 = vsyncadd (%p1239_p7), [#allocation3], 4294965248  ;;  %s1087_s27 = sand.u32 1, %s883_s13   ;;  %p1240_p13 = scmp.ne.s32.totalorder %s1230_s22, 0 }
  0x59   : > { %s560_s29 = sshll.u32 %s1087_s27, 8  ;;  %s195_s4 = scalar_lea.sflag [#allocation6], %s1087_s27 }
  0x5a   : > { %s1091_s6 = scalar_lea.vmem [#allocation5], %s560_s29 }
  0x5b   : > { %870 = dma.done.wait (%p1240_p13), %s195_s4, 4096  }
  0x5c   : > { %872 = vsyncadd (%p1240_p13), %s195_s4, 4294963200  ;;  %v907_v0 = vmov 0   ;;  %v301_v1 = vld [vmem:[%s1091_s6 + $0x80] sm:$0xff]  ;;  %v302_v2 = vld [vmem:[%s1091_s6 + $0x88] sm:$0xff]  ;;  %s568_s9 = sshll.u32 %s891_s15, 10  ;;  %s439_s15 = scalar_lea.sflag [#allocation4], %s1087_s27 }
  0x5d   : > { %754 = vset.pattern.permute.xlu1 %v907_v0  ;;  %753 = vset.pattern.permute.xlu0 %v907_v0  ;;  %v285_v3 = vld [vmem:[%s1091_s6] sm:$0xff]  ;;  %v625_v4 = vpack.c.bf16 %v302_v2, %v301_v1  ;;  %v286_v5 = vld [vmem:[%s1091_s6 + $0x8] sm:$0xff]  ;;  %v303_v6 = vld [vmem:[%s1091_s6 + $0x90] sm:$0xff]  ;;  %s1169_s18 = scalar_lea.hbm %s1223_s3, %s568_s9  ;;  %s908_s7 = smov [#allocation7]  }
  0x5e   : > { %v304_v7 = vld [vmem:[%s1091_s6 + $0x98] sm:$0xff]  ;;  %v627_v8 = vpack.c.bf16 %v286_v5, %v285_v3  ;;  %v287_v10 = vld [vmem:[%s1091_s6 + $0x10] sm:$0xff]  ;;  %v305_v12 = vld [vmem:[%s1091_s6 + $0xa0] sm:$0xff]  ;;  %s817_s8 = sshll.u32 %s908_s7, 4  ;;  %s818_s8 = int_to_ptr.vmem [resolvable:$false] %s817_s8 }
  0x5f   : > { %v629_v9 = vpack.c.bf16 %v304_v7, %v303_v6  ;;  %v288_v11 = vld [vmem:[%s1091_s6 + $0x18] sm:$0xff]  ;;  %626 = vmatprep.subr.bf16.mxu0 %v625_v4  ;;  %657 = vmatprep.subr.bf16.mxu1 %v625_v4  ;;  %v306_v13 = vld [vmem:[%s1091_s6 + $0xa8] sm:$0xff]  ;;  %v289_v16 = vld [vmem:[%s1091_s6 + $0x20] sm:$0xff]  ;;  %s819_s21 = scalar_lea.vmem %s818_s8, 2048 }
  0x60   : > { %628 = vmatpush3.bf16.msra.mxu0 %v627_v8  ;;  %665 = vmatpush3.bf16.msra.mxu1 %v627_v8  ;;  %v631_v14 = vpack.c.bf16 %v288_v11, %v287_v10  ;;  %v633_v15 = vpack.c.bf16 %v306_v13, %v305_v12  ;;  %v290_v17 = vld [vmem:[%s1091_s6 + $0x28] sm:$0xff]  ;;  %v307_v18 = vld [vmem:[%s1091_s6 + $0xb0] sm:$0xff]  ;;  %v308_v19 = vld [vmem:[%s1091_s6 + $0xb8] sm:$0xff] }
  0x61   : > { %630 = vmatprep.subr.bf16.mxu0 %v629_v9  ;;  %658 = vmatprep.subr.bf16.mxu1 %v629_v9  ;;  %v635_v20 = vpack.c.bf16 %v290_v17, %v289_v16  ;;  %v637_v21 = vpack.c.bf16 %v308_v19, %v307_v18  ;;  %v291_v22 = vld [vmem:[%s1091_s6 + $0x30] sm:$0xff]  ;;  %v292_v23 = vld [vmem:[%s1091_s6 + $0x38] sm:$0xff]  ;;  %v309_v24 = vld [vmem:[%s1091_s6 + $0xc0] sm:$0xff] }
  0x62   : > { %v310_v25 = vld [vmem:[%s1091_s6 + $0xc8] sm:$0xff]  ;;  %v639_v28 = vpack.c.bf16 %v292_v23, %v291_v22  ;;  %v293_v30 = vld [vmem:[%s1091_s6 + $0x40] sm:$0xff]  ;;  %v311_v32 = vld [vmem:[%s1091_s6 + $0xd0] sm:$0xff] }
  0x63   : > { %v222_v26 = vld [vmem:[#allocation2 + $0x8] sm:$0xff]  ;;  %v641_v29 = vpack.c.bf16 %v310_v25, %v309_v24  ;;  %v312_v33 = vld [vmem:[%s1091_s6 + $0xd8] sm:$0xff]  ;;  %v239_v35 = vld [vmem:[%s1221_s1 + $0x10] sm:$0xff] }
  0x64   : > { %632 = vmatpush3.bf16.msra.mxu0 %v631_v14  ;;  %666 = vmatpush3.bf16.msra.mxu1 %v631_v14  ;;  %v230_v27 = vld [vmem:[#allocation2 + $0x48] sm:$0xff]  ;;  %v237_v36 = vld [vmem:[%s1221_s1] sm:$0xff]  ;;  %v645_v37 = vpack.c.bf16 %v312_v33, %v311_v32  ;;  %v295_v38 = vld [vmem:[%s1091_s6 + $0x50] sm:$0xff] }
  0x65   : > { %634 = vmatprep.subr.bf16.mxu0 %v633_v15  ;;  %659 = vmatprep.subr.bf16.mxu1 %v633_v15  ;;  %v294_v31 = vld [vmem:[%s1091_s6 + $0x48] sm:$0xff]  ;;  %v296_v39 = vld [vmem:[%s1091_s6 + $0x58] sm:$0xff]  ;;  %v313_v40 = vld [vmem:[%s1091_s6 + $0xe0] sm:$0xff] }
  0x66   : > { %381 = vmatprep.mubr.f32.mxu0 %v222_v26  ;;  %401 = vmatprep.mubr.f32.mxu1 %v230_v27  ;;  %v643_v34 = vpack.c.bf16 %v294_v31, %v293_v30  ;;  %v314_v41 = vld [vmem:[%s1091_s6 + $0xe8] sm:$0xff]  ;;  %v240_v42 = vld [vmem:[%s1221_s1 + $0x18] sm:$0xff]  ;;  %v647_v44 = vpack.c.bf16 %v296_v39, %v295_v38  ;;  %v297_v46 = vld [vmem:[%s1091_s6 + $0x60] sm:$0xff] }
  0x67   : > { %257 = vperm.xlu1 %754, %v239_v35   ;;  %247 = vperm.xlu0 %753, %v237_v36   ;;  %v238_v43 = vld [vmem:[%s1221_s1 + $0x8] sm:$0xff]  ;;  %v649_v45 = vpack.c.bf16 %v314_v41, %v313_v40  ;;  %v315_v48 = vld [vmem:[%s1091_s6 + $0xf0] sm:$0xff]  ;;  %v316_v49 = vld [vmem:[%s1091_s6 + $0xf8] sm:$0xff] }
  0x68   : > { %636 = vmatpush3.bf16.msra.mxu0 %v635_v20  ;;  %667 = vmatpush3.bf16.msra.mxu1 %v635_v20  ;;  %v298_v47 = vld [vmem:[%s1091_s6 + $0x68] sm:$0xff]  ;;  %v241_v51 = vld [vmem:[%s1221_s1 + $0x20] sm:$0xff]  ;;  %v653_v53 = vpack.c.bf16 %v316_v49, %v315_v48  ;;  %v299_v54 = vld [vmem:[%s1091_s6 + $0x70] sm:$0xff] }
  0x69   : > { %638 = vmatprep.subr.bf16.mxu0 %v637_v21  ;;  %660 = vmatprep.subr.bf16.mxu1 %v637_v21  ;;  %v242_v50 = vld [vmem:[%s1221_s1 + $0x28] sm:$0xff]  ;;  %v651_v52 = vpack.c.bf16 %v298_v47, %v297_v46  ;;  %v300_v55 = vld [vmem:[%s1091_s6 + $0x78] sm:$0xff]  ;;  %v243_v57 = vld [vmem:[%s1221_s1 + $0x30] sm:$0xff]  ;;  %s561_s6 = sshll.u32 %s1087_s27, 6 }
  0x6a   : > { %v244_v56 = vld [vmem:[%s1221_s1 + $0x38] sm:$0xff]  ;;  %v655_v58 = vpack.c.bf16 %v300_v55, %v299_v54  ;;  %v221_v59 = vld [vmem:[#allocation2] sm:$0xff]  ;;  %v223_v63 = vld [vmem:[#allocation2 + $0x10] sm:$0xff]  ;;  %s1154_s22 = scalar_lea.vmem [#allocation7], %s561_s6 }
  0x6b   : > { %262 = vperm.xlu1 %754, %v240_v42   ;;  %252 = vperm.xlu0 %753, %v238_v43   ;;  %v229_v60 = vld [vmem:[#allocation2 + $0x40] sm:$0xff]  ;;  %v224_v61 = vld [vmem:[#allocation2 + $0x18] sm:$0xff]  ;;  %v231_v0 = vld [vmem:[#allocation2 + $0x50] sm:$0xff]  ;;  %s453_s24 = sshll.u32 %s1154_s22, 4  ;;  %s1162_s24 = int_to_ptr.vmem [resolvable:$true] %s453_s24 }
  0x6c   : > { %640 = vmatpush3.bf16.msra.mxu0 %v639_v28  ;;  %668 = vmatpush3.bf16.msra.mxu1 %v639_v28  ;;  %v232_v62 = vld [vmem:[#allocation2 + $0x58] sm:$0xff]  ;;  %v226_v1 = vld [vmem:[#allocation2 + $0x28] sm:$0xff]  ;;  %v225_v3 = vld [vmem:[#allocation2 + $0x20] sm:$0xff]  ;;  %s813_s26 = scalar_lea.vmem %s1162_s24, 1024  ;;  %p820_p12 = scmp.lt.s32.totalorder %s1162_s24, %s818_s8 }
  0x6d   : > { %642 = vmatprep.subr.bf16.mxu0 %v641_v29  ;;  %661 = vmatprep.subr.bf16.mxu1 %v641_v29  ;;  %v234_v2 = vld [vmem:[#allocation2 + $0x68] sm:$0xff]  ;;  %v233_v4 = vld [vmem:[#allocation2 + $0x60] sm:$0xff]  ;;  %v228_v5 = vld [vmem:[#allocation2 + $0x38] sm:$0xff]  ;;  %p814_p4 = scmp.ne.s32.totalorder %s1162_s24, %s813_s26  ;;  %p821_p11 = scmp.lt.s32.totalorder %s819_s21, %s813_s26 }
  0x6e   : > { %v236_v6 = vld [vmem:[#allocation2 + $0x78] sm:$0xff]  ;;  %v227_v7 = vld [vmem:[#allocation2 + $0x30] sm:$0xff] }
  0x6f   : > { %272 = vperm.xlu1 %754, %v242_v50   ;;  %267 = vperm.xlu0 %753, %v241_v51   ;;  %v235_v8 = vld [vmem:[#allocation2 + $0x70] sm:$0xff]  ;;  %p815_p6 = pnand %p814_p4, %p1027_p10  ;;  %p822_p0 = por %p821_p11, %p820_p12 }
  0x70   : > { %644 = vmatpush3.bf16.msra.mxu0 %v643_v34  ;;  %669 = vmatpush3.bf16.msra.mxu1 %v643_v34 }
  0x71   : > { %646 = vmatprep.subr.bf16.mxu0 %v645_v37  ;;  %662 = vmatprep.subr.bf16.mxu1 %v645_v37  ;;  %p816_p8 = pneg %p815_p6 }
  0x73   : > { %282 = vperm.xlu1 %754, %v244_v56   ;;  %277 = vperm.xlu0 %753, %v243_v57   ;;  %p823_p5 = pnand %p822_p0, %p816_p8 }
  0x74   : > { %648 = vmatpush3.bf16.msra.mxu0 %v647_v44  ;;  %670 = vmatpush3.bf16.msra.mxu1 %v647_v44 }
  0x75   : > { %650 = vmatprep.subr.bf16.mxu0 %v649_v45  ;;  %663 = vmatprep.subr.bf16.mxu1 %v649_v45 }
  0x78   : > { %652 = vmatpush3.bf16.msra.mxu0 %v651_v52  ;;  %671 = vmatpush3.bf16.msra.mxu1 %v651_v52 }
  0x79   : > { %654 = vmatprep.subr.bf16.mxu0 %v653_v53  ;;  %664 = vmatprep.subr.bf16.mxu1 %v653_v53 }
  0x7c   : > { %656 = vmatpush3.bf16.msra.mxu0 %v655_v58  ;;  %672 = vmatpush3.bf16.msra.mxu1 %v655_v58 }
  0x7f   : > { %382 = vmatmul.mubr.f32.vlgmr.msra.gmra.mrb[0].mxu0 %v221_v59  ;;  %402 = vmatmul.mubr.f32.vlgmr.msra.gmra.mrb[0].mxu1 %v229_v60 }
  0x80   : > { %386 = vmatprep.mubr.f32.mxu0 %v224_v61  ;;  %406 = vmatprep.mubr.f32.mxu1 %v232_v62 }
  0x83   : > { %387 = vmatmul.mubr.f32.gmra.mrb[2].mxu0 %v223_v63  ;;  %407 = vmatmul.mubr.f32.gmra.mrb[2].mxu1 %v231_v0 }
  0x84   : > { %391 = vmatprep.mubr.f32.mxu0 %v226_v1  ;;  %411 = vmatprep.mubr.f32.mxu1 %v234_v2 }
  0x87   : > { %392 = vmatmul.mubr.f32.gmra.mrb[4].mxu0 %v225_v3  ;;  %412 = vmatmul.mubr.f32.gmra.mrb[4].mxu1 %v233_v4 }
  0x88   : > { %396 = vmatprep.mubr.f32.mxu0 %v228_v5  ;;  %416 = vmatprep.mubr.f32.mxu1 %v236_v6 }
  0x8b   : > { %397 = vmatmul.mubr.f32.gmra.mrb[6].mxu0 %v227_v7  ;;  %417 = vmatmul.mubr.f32.gmra.mrb[6].mxu1 %v235_v8 }
  0xe6   : > { %v248_v9 = vpop.permute.xlu0 %247  ;;  %v258_v10 = vpop.permute.xlu1 %257 }
  0xea   : > { %v253_v11 = vpop.permute.xlu0 %252  ;;  %v263_v12 = vpop.permute.xlu1 %262 }
  0xee   : > { %v268_v19 = vpop.permute.xlu0 %267  ;;  %v273_v28 = vpop.permute.xlu1 %272 }
  0xf2   : > { %v278_v37 = vpop.permute.xlu0 %277  ;;  %v283_v46 = vpop.permute.xlu1 %282 }
 0x152   : > { %v601_v13 = vpop.f32.mrb[0].mxu0  ;;  %v613_v14 = vpop.f32.mrb[0].mxu1 }
 0x153   : > { %v602_v15 = vpop.f32.mrb[1].mxu0  ;;  %v614_v16 = vpop.f32.mrb[1].mxu1 }
 0x154   : > { %v603_v17 = vadd.f32 %v602_v15, %v601_v13  ;;  %v615_v18 = vadd.f32 %v614_v16, %v613_v14 }
 0x156   : > { %v422_v20 = vmul.f32 %v603_v17, %v248_v9  ;;  %v426_v21 = vmul.f32 %v615_v18, %v268_v19  ;;  %v604_v22 = vpop.f32.mrb[2].mxu0  ;;  %v616_v23 = vpop.f32.mrb[2].mxu1 }
 0x157   : > { %v605_v24 = vpop.f32.mrb[3].mxu0  ;;  %v617_v25 = vpop.f32.mrb[3].mxu1 }
 0x158   : > { %430 = vst [vmem:[%s1154_s22] sm:$0xff] %v422_v20  ;;  %434 = vst [vmem:[%s1154_s22 + $0x20] sm:$0xff] %v426_v21  ;;  %v606_v26 = vadd.f32 %v605_v24, %v604_v22  ;;  %v618_v27 = vadd.f32 %v617_v25, %v616_v23 }
 0x15a   : > { %v423_v29 = vmul.f32 %v606_v26, %v253_v11  ;;  %v427_v30 = vmul.f32 %v618_v27, %v273_v28  ;;  %v607_v31 = vpop.f32.mrb[4].mxu0  ;;  %v619_v32 = vpop.f32.mrb[4].mxu1 }
 0x15b   : > { %v608_v33 = vpop.f32.mrb[5].mxu0  ;;  %v620_v34 = vpop.f32.mrb[5].mxu1 }
 0x15c   : > { %431 = vst [vmem:[%s1154_s22 + $0x8] sm:$0xff] %v423_v29  ;;  %435 = vst [vmem:[%s1154_s22 + $0x28] sm:$0xff] %v427_v30  ;;  %v609_v35 = vadd.f32 %v608_v33, %v607_v31  ;;  %v621_v36 = vadd.f32 %v620_v34, %v619_v32 }
 0x15e   : > { %v424_v38 = vmul.f32 %v609_v35, %v258_v10  ;;  %v428_v39 = vmul.f32 %v621_v36, %v278_v37  ;;  %v610_v40 = vpop.f32.mrb[6].mxu0  ;;  %v622_v41 = vpop.f32.mrb[6].mxu1 }
 0x15f   : > { %v611_v42 = vpop.f32.mrb[7].mxu0  ;;  %v623_v43 = vpop.f32.mrb[7].mxu1 }
 0x160   : > { %432 = vst [vmem:[%s1154_s22 + $0x10] sm:$0xff] %v424_v38  ;;  %436 = vst [vmem:[%s1154_s22 + $0x30] sm:$0xff] %v428_v39  ;;  %v612_v44 = vadd.f32 %v611_v42, %v610_v40  ;;  %v624_v45 = vadd.f32 %v623_v43, %v622_v41 }
 0x162   : > { %v425_v47 = vmul.f32 %v612_v44, %v263_v12  ;;  %v429_v48 = vmul.f32 %v624_v45, %v283_v46 }
 0x164   : > { %433 = vst [vmem:[%s1154_s22 + $0x18] sm:$0xff] %v425_v47  ;;  %437 = vst [vmem:[%s1154_s22 + $0x38] sm:$0xff] %v429_v48 }
 0x165   : > { %826 = shalt.err (!%p823_p5)
}
 0x166   : > { %s827_s19 = scalar_lea.hbm %s1169_s18, 1024  ;;  %s831_s4 = scalar_lea.hbm %s1223_s3, 2048 }
 0x167   : > { %p828_p9 = scmp.ne.s32.totalorder %s1169_s18, %s827_s19  ;;  %p832_p3 = scmp.lt.u32.totalorder %s1169_s18, %s1223_s3 }
 0x168   : > { %p833_p7 = scmp.lt.u32.totalorder %s831_s4, %s827_s19  ;;  %p835_p4 = scmp.lt.u32.totalorder %s827_s19, %s1169_s18 }
 0x169   : > { %p829_p1 = pnand %p828_p9, %p1027_p10 }
 0x16a   : > { %p834_p13 = por %p833_p7, %p832_p3 }
 0x16b   : > { %p830_p2 = pneg %p829_p1 }
 0x16c   : > { %p836_p6 = por %p835_p4, %p834_p13 }
 0x16e   : > { %p837_p8 = pnand %p836_p6, %p830_p2 }
 0x170   : > { %840 = shalt.err (!%p837_p8)
}
 0x171   : > { %s909_s22 = smov 128   ;;  %s910_s9 = smov 8  }
 0x172   : > { %679 = dma.vmem_to_hbm [thread:$0]  (%p1027_p10), %s1162_s24, 1024, %s1169_s18, %s439_s15, %s909_s22, %s909_s22, %s910_s9  }
 0x173 PF: > { %s468_s10 = sand.u32 1, %s879_s12   ;;  %p1241_p12 = scmp.ne.s32.totalorder %s1231_s23, 0 }
 0x174   : > { %p1242_p11 = scmp.ge.s32.totalorder %s899_s17, 2  ;;  %s469_s11 = scalar_lea.sflag [#allocation4], %s468_s10 }
 0x176   : > { %p690_p0 = pnand %p1242_p11, %p1241_p12 }
 0x178   : > { %874 = dma.done.wait (!%p690_p0), %s469_s11, 1024  }
 0x179   : > { %876 = vsyncadd (!%p690_p0), %s469_s11, 4294966272  ;;  %s20_s17 = sadd.s32 1, %s899_s17   ;;  %s1243_s12 = smov %s883_s13 }
 0x17a   : > { %p17_p5 = scmp.ge.s32.totalorder %s20_s17, 4   ;;  %s1244_s13 = smov %s887_s14 }
 0x17b   : > { %s1245_s14 = smov %s1036_s5  ;;  %s1246_s15 = smov %s895_s16 }
 0x17c   : > { %s1247_s16 = smov %s1249_s28  ;;  %19 = sbr.rel (!%p17_p5) target bundleno = 7 (0x7), region = 82 }
 0x183   :  { %474 = vsyncpa [#allocation3], 1 }
 0x184   :  { %476 = vsyncpa [#allocation3 + $0x1], 1 }
 0x185   :  { %477 = vsyncpa [#allocation6], 1 }
 0x186   :  { %479 = vsyncpa [#allocation6 + $0x1], 1 }
 0x187   :  { %480 = vsyncpa [#allocation4], 1 }
 0x188   :  { %482 = vsyncpa [#allocation4 + $0x1], 1 }

</bundles_post_ra>
